<compile_context>
chip_gen: v7x
topology: tpu7x:2x2x1
jax: 0.10.0
libtpu: 0.0.40
codegen_flags: <defaults>
</compile_context>

<pallas_src>
import functools

import jax
import jax.numpy as jnp
from jax.experimental import pallas as pl
from jax.experimental.pallas import tpu as pltpu

LANE = 128
SUBLANE = 8

# Target bytes of each input block streamed per grid step (~4 MiB keeps the
# kernel near the HBM roofline on all generations while fitting VMEM).
_TARGET_BLOCK_BYTES = 4 << 20


def _tensorcores_per_chip() -> int:
    """2 TensorCores behind one device only on v7x; v5e/v6e have 1."""
    try:
        kind = jax.devices()[0].device_kind.lower()
    except Exception:
        return 1
    return 2 if ("v7" in kind or "7x" in kind) else 1


def _rmse_kernel(x_ref, y_ref, o_ref, *, total_chunks, tile_chunks,
                 chunk_unroll, blocks_per_core, multi_core, sub):
    if multi_core:
        c = pl.program_id(0)          # core axis (CORE_PARALLEL on v7x)
        i = pl.program_id(1)          # reduction axis
        blk = c * blocks_per_core + i
    else:
        i = pl.program_id(0)
        blk = i

    # Output block index is constant along the reduction axis, so o_ref stays
    # resident in VMEM and is the per-core accumulator (no extra scratch).
    @pl.when(i == 0)
    def _init():
        o_ref[...] = jnp.zeros_like(o_ref)

    # Valid (sub, LANE) chunks in this logical block.  The last real block may
    # be partial; clamped duplicate blocks (multi-core tail) have limit <= 0
    # and are skipped.  Chunk-unit math -> no int32 overflow for huge inputs.
    limit = total_chunks - blk * tile_chunks

    @pl.when(limit >= tile_chunks)
    def _full_block():
        # Stream slab-by-slab so only a few vregs are live at a time (no
        # block-sized f32 temporaries) -- pure VPU work hidden under the DMA.
        def body(j, acc):
            s = pl.ds(pl.multiple_of(j * chunk_unroll, chunk_unroll), chunk_unroll)
            d = x_ref[s].astype(jnp.float32) - y_ref[s].astype(jnp.float32)
            return acc + jnp.sum(d * d, axis=0)

        acc = jax.lax.fori_loop(0, tile_chunks // chunk_unroll, body,
                                jnp.zeros((sub, LANE), jnp.float32))
        o_ref[...] += acc[None]

    @pl.when(jnp.logical_and(limit > 0, limit < tile_chunks))
    def _partial_block():
        # Ragged edge block: walk only the valid chunks (never read the
        # undefined padding of the partial block) -- no element mask needed.
        def body(j, acc):
            d = x_ref[j].astype(jnp.float32) - y_ref[j].astype(jnp.float32)
            return acc + d * d

        acc = jax.lax.fori_loop(0, limit, body,
                                jnp.zeros((sub, LANE), jnp.float32))
        o_ref[...] += acc[None]


def rmse(x, y):
    assert x.shape == y.shape, "x and y must have the same shape"
    n = x.size

    # Sublane granularity of the native dtype (f32: 8, bf16: 16, int8/fp8: 32).
    itemsize = jnp.dtype(x.dtype).itemsize
    sub = SUBLANE * max(1, 4 // max(itemsize, 1))
    chunk_elems = sub * LANE                     # one (sub, LANE) chunk

    x_flat = jnp.ravel(x)
    y_flat = jnp.ravel(y)

    total_chunks = n // chunk_elems
    n_main = total_chunks * chunk_elems

    # Ragged tail (< sub*128 elements) handled in plain JAX so the kernel
    # inputs are a pure reshape (no jnp.pad full-array copy).
    tail_sq = jnp.float32(0.0)
    if n_main < n:
        dt = x_flat[n_main:].astype(jnp.float32) - y_flat[n_main:].astype(jnp.float32)
        tail_sq = jnp.sum(dt * dt)

    if total_chunks == 0:  # input smaller than one chunk -> no kernel needed
        return jnp.sqrt(tail_sq / n)

    def to3d(flat):
        if n_main < n:
            flat = jax.lax.slice(flat, (0,), (n_main,))
        return flat.reshape(total_chunks, sub, LANE)

    x3d = to3d(x_flat)
    y3d = to3d(y_flat)

    # Dtype-scaled block size: chunk_bytes is 4 KiB for all standard dtypes,
    # so this targets ~4 MiB per input block (f32: 8192 rows, bf16: 16384).
    chunk_bytes = chunk_elems * itemsize
    tile_chunks = max(1, min(total_chunks, _TARGET_BLOCK_BYTES // chunk_bytes))
    chunk_unroll = next(u for u in (8, 4, 2, 1) if tile_chunks % u == 0)

    num_blocks = pl.cdiv(total_chunks, tile_chunks)

    num_cores = _tensorcores_per_chip()
    multi_core = (num_cores > 1) and (num_blocks > 1)
    use_cores = num_cores if multi_core else 1
    blocks_per_core = pl.cdiv(num_blocks, use_cores)

    if multi_core:
        grid = (use_cores, blocks_per_core)

        def in_map(c, i):
            # Clamp so every DMA stays in bounds; duplicated clamped blocks
            # are skipped inside the kernel (limit <= 0).
            return (jnp.minimum(c * blocks_per_core + i, num_blocks - 1), 0, 0)

        def out_map(c, i):
            return (c, 0, 0)

        dims = (pltpu.CORE_PARALLEL, pltpu.ARBITRARY)
    else:
        grid = (num_blocks,)

        def in_map(i):
            return (i, 0, 0)

        def out_map(i):
            return (0, 0, 0)

        dims = (pltpu.ARBITRARY,)

    block_bytes = tile_chunks * chunk_bytes
    # 2 inputs x 2 pipeline buffers x block + headroom (fits v7x's 64 MiB TC).
    vmem_limit = int(max(16 << 20, 4 * block_bytes + (4 << 20)))

    kernel = functools.partial(
        _rmse_kernel,
        total_chunks=total_chunks,
        tile_chunks=tile_chunks,
        chunk_unroll=chunk_unroll,
        blocks_per_core=blocks_per_core,
        multi_core=multi_core,
        sub=sub,
    )

    partials = pl.pallas_call(
        kernel,
        out_shape=jax.ShapeDtypeStruct((use_cores, sub, LANE), jnp.float32),
        grid_spec=pltpu.PrefetchScalarGridSpec(
            num_scalar_prefetch=0,
            grid=grid,
            in_specs=[
                pl.BlockSpec((tile_chunks, sub, LANE), in_map),
                pl.BlockSpec((tile_chunks, sub, LANE), in_map),
            ],
            out_specs=pl.BlockSpec((1, sub, LANE), out_map),
        ),
        compiler_params=pltpu.CompilerParams(
            dimension_semantics=dims,
            vmem_limit_bytes=vmem_limit,
        ),
    )(x3d, y3d)

    total = jnp.sum(partials) + tail_sq
    return jnp.sqrt(total / n)


if __name__ == "__main__":
    key = jax.random.PRNGKey(0)
    kx, ky = jax.random.split(key)
    x = jax.random.normal(kx, (2, 4, 16, 16), dtype=jnp.float32)
    y = jax.random.normal(ky, (2, 4, 16, 16), dtype=jnp.float32)

    out = rmse(x, y)
    jax.block_until_ready(out)

    ref = jnp.sqrt(jnp.mean((x - y) ** 2))
    assert jnp.allclose(out, ref, rtol=1e-5, atol=1e-6), (out, ref)
    print("KERNEL_OK")
</pallas_src>

<mosaic_0001>
module attributes {stable_mosaic.version = 11 : i64} {
  func.func @_rmse_kernel(%arg0: i32, %arg1: memref<2x8x128xf32, #tpu.memory_space<vmem>>, %arg2: memref<2x8x128xf32, #tpu.memory_space<vmem>>, %arg3: memref<1x8x128xf32, #tpu.memory_space<vmem>>) attributes {dimension_semantics = [#tpu.dimension_semantics<arbitrary>], iteration_bounds = array<i64: 1>, scalar_prefetch = 0 : i64, scratch_operands = 0 : i64, tpu.core_type = #tpu.core_type<tc>, window_params = [{transform_indices = @transform_0, window_bounds = array<i64: 2, 8, 128>}, {transform_indices = @transform_1, window_bounds = array<i64: 2, 8, 128>}, {pipeline_mode = #tpu.pipeline_mode<synchronous>, transform_indices = @transform_2, window_bounds = array<i64: 1, 8, 128>}]} {
    %c0_i32 = arith.constant 0 : i32
    %0 = arith.cmpi eq, %arg0, %c0_i32 : i32
    %1 = arith.extui %0 : i1 to i32
    %c0_i32_0 = arith.constant 0 : i32
    %2 = arith.cmpi ne, %1, %c0_i32_0 : i32
    scf.if %2 {
      %cst = arith.constant 0.000000e+00 : f32
      %13 = vector.broadcast %cst : f32 to vector<1x8x128xf32>
      %c0 = arith.constant 0 : index
      %c0_7 = arith.constant 0 : index
      %c0_8 = arith.constant 0 : index
      %14 = vector.load %arg3[%c0, %c0_7, %c0_8] : memref<1x8x128xf32, #tpu.memory_space<vmem>>, vector<1x8x128xf32>
      tpu.vector_store %arg3[%c0, %c0_7, %c0_8], %13 {strides = array<i32>} : memref<1x8x128xf32, #tpu.memory_space<vmem>>, vector<1x8x128xf32>,
    } else {
    }
    %c2_i32 = arith.constant 2 : i32
    %3 = arith.muli %arg0, %c2_i32 : i32
    %c2_i32_1 = arith.constant 2 : i32
    %4 = arith.subi %c2_i32_1, %3 : i32
    %c2_i32_2 = arith.constant 2 : i32
    %5 = arith.cmpi sge, %4, %c2_i32_2 : i32
    %6 = arith.extui %5 : i1 to i32
    %c0_i32_3 = arith.constant 0 : i32
    %7 = arith.cmpi ne, %6, %c0_i32_3 : i32
    scf.if %7 {
      %cst = arith.constant 0.000000e+00 : f32
      %13 = vector.broadcast %cst : f32 to vector<8x128xf32>
      %c0_i32_7 = arith.constant 0 : i32
      %c2_i32_8 = arith.constant 2 : i32
      %14 = arith.muli %c0_i32_7, %c2_i32_8 : i32
      %15 = tpu.assume_multiple %14, 2 : i32
      %16 = arith.index_cast %15 : i32 to index
      %c0 = arith.constant 0 : index
      %c0_9 = arith.constant 0 : index
      %17 = vector.load %arg1[%16, %c0, %c0_9] : memref<2x8x128xf32, #tpu.memory_space<vmem>>, vector<2x8x128xf32>
      %18 = arith.index_cast %15 : i32 to index
      %c0_10 = arith.constant 0 : index
      %c0_11 = arith.constant 0 : index
      %19 = vector.load %arg2[%18, %c0_10, %c0_11] : memref<2x8x128xf32, #tpu.memory_space<vmem>>, vector<2x8x128xf32>
      %20 = arith.subf %17, %19 : vector<2x8x128xf32>
      %21 = arith.mulf %20, %20 : vector<2x8x128xf32>
      %cst_12 = arith.constant dense<0.000000e+00> : vector<8x128xf32>
      %22 = vector.multi_reduction <add>, %21, %cst_12 [0] : vector<2x8x128xf32> to vector<8x128xf32>
      %23 = arith.addf %13, %22 : vector<8x128xf32>
      %c1_i32 = arith.constant 1 : i32
      %c0_13 = arith.constant 0 : index
      %c0_14 = arith.constant 0 : index
      %c0_15 = arith.constant 0 : index
      %24 = vector.load %arg3[%c0_13, %c0_14, %c0_15] : memref<1x8x128xf32, #tpu.memory_space<vmem>>, vector<1x8x128xf32>
      %25 = vector.shape_cast %23 : vector<8x128xf32> to vector<1x8x128xf32>
      %26 = arith.addf %24, %25 : vector<1x8x128xf32>
      %c0_16 = arith.constant 0 : index
      %c0_17 = arith.constant 0 : index
      %c0_18 = arith.constant 0 : index
      %27 = vector.load %arg3[%c0_16, %c0_17, %c0_18] : memref<1x8x128xf32, #tpu.memory_space<vmem>>, vector<1x8x128xf32>
      tpu.vector_store %arg3[%c0_16, %c0_17, %c0_18], %26 {strides = array<i32>} : memref<1x8x128xf32, #tpu.memory_space<vmem>>, vector<1x8x128xf32>,
    } else {
    }
    %c0_i32_4 = arith.constant 0 : i32
    %8 = arith.cmpi sgt, %4, %c0_i32_4 : i32
    %c2_i32_5 = arith.constant 2 : i32
    %9 = arith.cmpi slt, %4, %c2_i32_5 : i32
    %10 = arith.andi %8, %9 : i1
    %11 = arith.extui %10 : i1 to i32
    %c0_i32_6 = arith.constant 0 : i32
    %12 = arith.cmpi ne, %11, %c0_i32_6 : i32
    scf.if %12 {
      %cst = arith.constant 0.000000e+00 : f32
      %13 = vector.broadcast %cst : f32 to vector<8x128xf32>
      %c0_i32_7 = arith.constant 0 : i32
      %14 = arith.subi %4, %c0_i32_7 : i32
      %15 = arith.addi %c0_i32_7, %14 : i32
      %c1_i32 = arith.constant 1 : i32
      %16 = scf.for %arg4 = %c0_i32_7 to %15 step %c1_i32 iter_args(%arg5 = %13) -> (vector<8x128xf32>)  : i32 {
        %21 = arith.index_cast %arg4 : i32 to index
        %c0_13 = arith.constant 0 : index
        %c0_14 = arith.constant 0 : index
        %22 = vector.load %arg1[%21, %c0_13, %c0_14] : memref<2x8x128xf32, #tpu.memory_space<vmem>>, vector<1x8x128xf32>
        %23 = vector.shape_cast %22 : vector<1x8x128xf32> to vector<8x128xf32>
        %24 = arith.index_cast %arg4 : i32 to index
        %c0_15 = arith.constant 0 : index
        %c0_16 = arith.constant 0 : index
        %25 = vector.load %arg2[%24, %c0_15, %c0_16] : memref<2x8x128xf32, #tpu.memory_space<vmem>>, vector<1x8x128xf32>
        %26 = vector.shape_cast %25 : vector<1x8x128xf32> to vector<8x128xf32>
        %27 = arith.subf %23, %26 : vector<8x128xf32>
        %28 = arith.mulf %27, %27 : vector<8x128xf32>
        %29 = arith.addf %arg5, %28 : vector<8x128xf32>
        scf.yield %29 : vector<8x128xf32>
      }
      %c0 = arith.constant 0 : index
      %c0_8 = arith.constant 0 : index
      %c0_9 = arith.constant 0 : index
      %17 = vector.load %arg3[%c0, %c0_8, %c0_9] : memref<1x8x128xf32, #tpu.memory_space<vmem>>, vector<1x8x128xf32>
      %18 = vector.shape_cast %16 : vector<8x128xf32> to vector<1x8x128xf32>
      %19 = arith.addf %17, %18 : vector<1x8x128xf32>
      %c0_10 = arith.constant 0 : index
      %c0_11 = arith.constant 0 : index
      %c0_12 = arith.constant 0 : index
      %20 = vector.load %arg3[%c0_10, %c0_11, %c0_12] : memref<1x8x128xf32, #tpu.memory_space<vmem>>, vector<1x8x128xf32>
      tpu.vector_store %arg3[%c0_10, %c0_11, %c0_12], %19 {strides = array<i32>} : memref<1x8x128xf32, #tpu.memory_space<vmem>>, vector<1x8x128xf32>,
    } else {
    }
    return
  }
  func.func @transform_0(%arg0: i32) -> (i32, i32, i32) {
    %c0_i32 = arith.constant 0 : i32
    %c0_i32_0 = arith.constant 0 : i32
    %c0_i32_1 = arith.constant 0 : i32
    return %arg0, %c0_i32, %c0_i32_0 : i32, i32, i32
  }
  func.func @transform_1(%arg0: i32) -> (i32, i32, i32) {
    %c0_i32 = arith.constant 0 : i32
    %c0_i32_0 = arith.constant 0 : i32
    %c0_i32_1 = arith.constant 0 : i32
    return %arg0, %c0_i32, %c0_i32_0 : i32, i32, i32
  }
  func.func @transform_2(%arg0: i32) -> (i32, i32, i32) {
    %c0_i32 = arith.constant 0 : i32
    %c0_i32_0 = arith.constant 0 : i32
    %c0_i32_1 = arith.constant 0 : i32
    %c0_i32_2 = arith.constant 0 : i32
    return %c0_i32, %c0_i32_0, %c0_i32_1 : i32, i32, i32
  }
}

</mosaic_0001>

<bundles_post_ra>
// kernel: tpu_custom_call.1
= control target key start
LH: loop header
LB: loop body
LE: loop exit
PB: predicated region body
PF: predicated region fallthrough
CT: control target
= control target key end

     0   :  { %7 = vsyncpa [#allocation3], 0  ;;  %s254_s0 = inlined_call_operand.hbm [shape: f32[2,8,128], index: 0, kind: input, shape index: {}]   ;;  %s255_s1 = inlined_call_operand.hbm [shape: f32[2,8,128], index: 1, kind: input, shape index: {}]   ;;  %s256_s2 = inlined_call_operand.hbm [shape: f32[1,8,128], index: 2, kind: output, shape index: {}]  }
   0x1   :  { %8 = vsyncpa [#allocation6], 0 }
   0x2   :  { %9 = vsyncpa [#allocation4], 0  ;;  %s198_s9 = smov [#allocation2]   ;;  %s126_s13 = scalar_lea.hbm %s254_s0, 256 }
   0x3   :  { %s15_s10 = sshll.u32 %s198_s9, 4  ;;  %p127_p0 = scmp.ne.s32.totalorder %s254_s0, %s126_s13  ;;  %s16_s10 = int_to_ptr.vmem [resolvable:$true] %s15_s10 }
   0x4   :  { %p130_p1 = scmp.lt.u32.totalorder %s126_s13, %s254_s0 }
   0x6   :  { %p132_p2 = pnand %p130_p1, %p127_p0 }
   0x8   :  { %135 = shalt.err (!%p132_p2)
}
   0x9   :  { %s136_s18 = scalar_lea.vmem %s16_s10, 256  ;;  %p141_p4 = scmp.lt.s32.totalorder %s16_s10, %s16_s10 }
   0xa   :  { %p137_p3 = scmp.ne.s32.totalorder %s16_s10, %s136_s18  ;;  %p142_p5 = scmp.lt.s32.totalorder %s136_s18, %s136_s18 }
   0xc   :  { %p143_p6 = por %p142_p5, %p141_p4 }
   0xe   :  { %p144_p7 = pnand %p143_p6, %p137_p3 }
  0x10   :  { %147 = shalt.err (!%p144_p7)
}
  0x11   :  { %s199_s19 = smov 128   ;;  %s200_s20 = smov 8  }
  0x12   :  { %21 = dma.hbm_to_vmem [thread:$0]  %s254_s0, 256, %s16_s10, [#allocation3], %s199_s19, %s199_s19, %s200_s20  }
  0x13   :  { %s201_s23 = smov [#allocation5]   ;;  %s148_s27 = scalar_lea.hbm %s255_s1, 256 }
  0x14   :  { %s27_s24 = sshll.u32 %s201_s23, 4  ;;  %p149_p8 = scmp.ne.s32.totalorder %s255_s1, %s148_s27  ;;  %s28_s24 = int_to_ptr.vmem [resolvable:$true] %s27_s24 }
  0x15   :  { %p152_p9 = scmp.lt.u32.totalorder %s148_s27, %s255_s1 }
  0x17   :  { %p154_p10 = pnand %p152_p9, %p149_p8 }
  0x19   :  { %157 = shalt.err (!%p154_p10)
}
  0x1a   :  { %s158_s4 = scalar_lea.vmem %s28_s24, 256  ;;  %p163_p12 = scmp.lt.s32.totalorder %s28_s24, %s28_s24 }
  0x1b   :  { %p159_p11 = scmp.ne.s32.totalorder %s28_s24, %s158_s4  ;;  %p164_p13 = scmp.lt.s32.totalorder %s158_s4, %s158_s4 }
  0x1d   :  { %p165_p0 = por %p164_p13, %p163_p12 }
  0x1f   :  { %p166_p1 = pnand %p165_p0, %p159_p11 }
  0x21   :  { %169 = shalt.err (!%p166_p1)
}
  0x22   :  { %33 = dma.hbm_to_vmem [thread:$0]  %s255_s1, 256, %s28_s24, [#allocation6], %s199_s19, %s199_s19, %s200_s20  }
  0x23   :  { %192 = dma.done.wait [#allocation3], 256  }
  0x24   :  { %193 = vsyncadd [#allocation3], 4294967040 }
  0x25   :  { %194 = dma.done.wait [#allocation6], 256  }
  0x26   :  { %195 = vsyncadd [#allocation6], 4294967040  ;;  %v53_v0 = vld [vmem:[#allocation2] sm:$0xff]  ;;  %v54_v1 = vld [vmem:[#allocation2 + $0x8] sm:$0xff]  ;;  %s202_s6 = smov [#allocation7]  }
  0x27   :  { %v56_v2 = vld [vmem:[#allocation5] sm:$0xff]  ;;  %v57_v3 = vld [vmem:[#allocation5 + $0x8] sm:$0xff]  ;;  %s97_s7 = sshll.u32 %s202_s6, 4  ;;  %s98_s7 = int_to_ptr.vmem [resolvable:$true] %s97_s7 }
  0x28   :  { %v58_v4 = vsub.f32 %v53_v0, %v56_v2  ;;  %v59_v5 = vsub.f32 %v54_v1, %v57_v3  ;;  %s170_s8 = scalar_lea.vmem %s98_s7, 128  ;;  %p175_p3 = scmp.lt.s32.totalorder %s98_s7, %s98_s7 }
  0x29   :  { %p171_p2 = scmp.ne.s32.totalorder %s98_s7, %s170_s8  ;;  %p176_p4 = scmp.lt.s32.totalorder %s170_s8, %s170_s8 }
  0x2a   :  { %v60_v6 = vmul.f32 %v58_v4, %v58_v4  ;;  %v61_v7 = vmul.f32 %v59_v5, %v59_v5 }
  0x2b   :  { %p177_p5 = por %p176_p4, %p175_p3 }
  0x2c   :  { %v62_v8 = vadd.f32 %v61_v7, %v60_v6 }
  0x2d   :  { %p178_p6 = pnand %p177_p5, %p171_p2 }
  0x2e   :  { %66 = vst [vmem:[#allocation7] sm:$0xff] %v62_v8 }
  0x2f   :  { %181 = shalt.err (!%p178_p6)
}
  0x30   :  { %s182_s10 = scalar_lea.hbm %s256_s2, 128 }
  0x31   :  { %p183_p7 = scmp.ne.s32.totalorder %s256_s2, %s182_s10  ;;  %p186_p8 = scmp.lt.u32.totalorder %s182_s10, %s256_s2 }
  0x33   :  { %p188_p9 = pnand %p186_p8, %p183_p7 }
  0x35   :  { %191 = shalt.err (!%p188_p9)
}
  0x36   :  { %100 = dma.vmem_to_hbm [thread:$0]  %s98_s7, 128, %s256_s2, [#allocation4]  }
  0x37   :  { %196 = dma.done.wait [#allocation4], 128  }
  0x38   :  { %197 = vsyncadd [#allocation4], 4294967168 }
  0x39   :  { %104 = vsyncpa [#allocation3], 1 }
  0x3a   :  { %105 = vsyncpa [#allocation6], 1 }
  0x3b   :  { %106 = vsyncpa [#allocation4], 1 }

</bundles_post_ra>
